<compile_context>
chip_gen: v6e
topology: v6e:2x2x1
jax: 0.10.0
libtpu: 0.0.40
codegen_flags: <defaults>
</compile_context>

<pallas_src>
import numpy as np

import jax
import jax.numpy as jnp
from jax.experimental import pallas as pl
from jax.experimental.pallas import tpu as pltpu

_LANE = 128
_SUBLANE = 8


def _round_up(v, m):
    return ((v + m - 1) // m) * m


# ---------------------------------------------------------------------------
# Fused Pallas kernel: one grid step == one packed group of graphs
# ---------------------------------------------------------------------------
def _fused_spatial_encoder_kernel(a_ref, x_ref, pool_ref,
                                  w1, b1, w2, b2, w3, b3, o_ref):
    """3 fused ChebConv(K=3) layers + global_add_pool for a packed graph group.

    a_ref    : [1, 2P, P]  block-diagonal [S ; S@S] over the packed graphs
    x_ref    : [1, P, F0]  packed, zero-padded node features
    pool_ref : [1, G, P]   pooling/mask matrix (row g sums real nodes of graph g)
    w*       : [3*Fi, Fo]  folded + K-concatenated Chebyshev weights
    b*       : [1, Fo]

    Weights arrive pre-folded (wrapper) so that with t = a @ h = [S@h ; S^2@h]:
        out = [h | t[:P] | t[P:]] @ Wcat + b
    which equals Tx0@W0 + Tx1@W1 + Tx2@W2 + b with Tx2 = 2*S@Tx1 - Tx0.
    """
    P = a_ref.shape[2]
    a = a_ref[0]          # [2P, P]
    pool = pool_ref[0]    # [G, P]
    h = x_ref[0]          # [P, F0]

    def cheb(h, w_ref, b_ref, act):
        # one MXU pass for both operator terms
        t = jnp.dot(a, h, preferred_element_type=jnp.float32)           # [2P, F]
        # lane-aligned concat (all F are multiples of 128)
        cat = jnp.concatenate([h, t[:P, :], t[P:, :]], axis=1)           # [P, 3F]
        out = (jnp.dot(cat, w_ref[...], preferred_element_type=jnp.float32)
               + b_ref[...])
        return jnp.maximum(out, 0.0) if act == "relu" else jnp.tanh(out)

    h = cheb(h, w1, b1, "relu")
    h = cheb(h, w2, b2, "relu")
    h = cheb(h, w3, b3, "tanh")

    # masked global_add_pool for all graphs of this group -> lane-dense [G, Fo]
    o_ref[0] = jnp.dot(pool, h, preferred_element_type=jnp.float32)


# ---------------------------------------------------------------------------
# Host-side glue: PyG ChebConv 'sym' norm (lambda_max = 2) as packed blocks
# ---------------------------------------------------------------------------
def _build_packed_operator(edge_index, batch, num_nodes, num_graphs,
                           rows_per_step=256):
    """S = 2L/lambda_max - I = -D^{-1/2} A D^{-1/2} (self loops removed),
    packed block-diagonally with G graphs per grid step, plus S^2 stacked below
    it and a [G, P] pooling/mask matrix.

    Assumes both edge directions are present (undirected input, as PyG Batch)."""
    ei = np.asarray(edge_index)
    bt = np.asarray(batch).astype(np.int64)
    src, dst = ei[0].astype(np.int64), ei[1].astype(np.int64)

    counts = np.bincount(bt, minlength=num_graphs).astype(np.int64)
    # vectorized within-graph node index (no per-node Python loop)
    order = np.argsort(bt, kind="stable")
    starts = np.concatenate([[0], np.cumsum(counts)[:-1]]).astype(np.int64)
    local = np.empty(num_nodes, np.int64)
    local[order] = np.arange(num_nodes) - np.repeat(starts, counts)

    n_pad = max(_SUBLANE, _round_up(int(counts.max()), _SUBLANE))
    graphs_per_step = max(1, min(num_graphs, rows_per_step // n_pad))
    n_steps = -(-num_graphs // graphs_per_step)
    P = graphs_per_step * n_pad

    # per-graph S blocks (and S^2, built once and shared by all 3 layers)
    w = np.where(src != dst, 1.0, 0.0).astype(np.float32)      # drop self loops
    deg = np.zeros(num_nodes, np.float32)
    np.add.at(deg, src, w)
    dinv = np.where(deg > 0, 1.0 / np.sqrt(deg), 0.0).astype(np.float32)
    norm = dinv[src] * w * dinv[dst]
    s_g = np.zeros((num_graphs, n_pad, n_pad), np.float32)
    np.add.at(s_g, (bt[dst], local[dst], local[src]), -norm)
    s2_g = np.matmul(s_g, s_g)

    a_blocks = np.zeros((n_steps, 2 * P, P), np.float32)
    pool = np.zeros((n_steps, graphs_per_step, P), np.float32)
    for g in range(num_graphs):
        st, slot = divmod(g, graphs_per_step)
        r = slot * n_pad
        a_blocks[st, r:r + n_pad, r:r + n_pad] = s_g[g]
        a_blocks[st, P + r:P + r + n_pad, r:r + n_pad] = s2_g[g]
        pool[st, slot, r:r + int(counts[g])] = 1.0

    step_idx = (bt // graphs_per_step).astype(np.int32)
    row_idx = ((bt % graphs_per_step) * n_pad + local).astype(np.int32)
    return a_blocks, pool, step_idx, row_idx, n_steps, graphs_per_step, P


def _cost_estimate(n_steps, P, G, dims_pad):
    per_step = 0
    for fi, fo in zip(dims_pad[:-1], dims_pad[1:]):
        per_step += 2 * (2 * P) * P * fi          # operator matmul [2P,P]@[P,Fi]
        per_step += 2 * P * (3 * fi) * fo         # feature matmul  [P,3Fi]@[3Fi,Fo]
    per_step += 2 * G * P * dims_pad[-1]          # pooling matmul
    flops = n_steps * per_step
    transcendentals = n_steps * P * dims_pad[-1]  # tanh, last layer
    weight_bytes = 4 * sum(3 * fi * fo + fo
                           for fi, fo in zip(dims_pad[:-1], dims_pad[1:]))
    io_bytes = 4 * n_steps * (2 * P * P + P * dims_pad[0]
                              + G * P + G * dims_pad[-1])
    return pl.CostEstimate(flops=int(flops),
                           transcendentals=int(transcendentals),
                           bytes_accessed=int(io_bytes + weight_bytes))


def spatial_encoder(x, edge_index, batch, num_graphs, params, rows_per_step=256):
    """Forward pass matching the PyTorch SpatialEncoder, as one fused kernel."""
    num_nodes, f_in = x.shape
    dims = [f_in] + [w.shape[-1] for (w, _) in params]
    dims_pad = [_round_up(d, _LANE) for d in dims]      # lane-dense everywhere

    a_blocks, pool, step_idx, row_idx, n_steps, G, P = _build_packed_operator(
        edge_index, batch, num_nodes, num_graphs, rows_per_step)

    # pack node features into [n_steps, P, F0_pad] padded blocks
    x_pad = jnp.pad(x.astype(jnp.float32), ((0, 0), (0, dims_pad[0] - f_in)))
    x_blocks = (jnp.zeros((n_steps, P, dims_pad[0]), jnp.float32)
                .at[jnp.asarray(step_idx), jnp.asarray(row_idx)].set(x_pad))

    # fold Chebyshev recurrence, concat the 3 K-terms, zero-pad to lane multiples
    folded = []
    for (w, b), fi_p, fo_p in zip(params, dims_pad[:-1], dims_pad[1:]):
        terms = [w[0] - w[2], w[1], 2.0 * w[2]]
        terms = [jnp.pad(t, ((0, fi_p - t.shape[0]), (0, fo_p - t.shape[1])))
                 for t in terms]
        wcat = jnp.concatenate(terms, axis=0).astype(jnp.float32)   # [3*Fi_p, Fo_p]
        b_p = jnp.pad(jnp.reshape(b, (1, -1)).astype(jnp.float32),
                      ((0, 0), (0, fo_p - b.shape[-1])))
        folded += [wcat, b_p]

    f_out, fo_pad = dims[-1], dims_pad[-1]

    in_specs = [pl.BlockSpec((1, 2 * P, P), lambda s: (s, 0, 0)),       # [S;S^2]
                pl.BlockSpec((1, P, dims_pad[0]), lambda s: (s, 0, 0)),  # features
                pl.BlockSpec((1, G, P), lambda s: (s, 0, 0))]            # pool/mask
    for fi_p, fo_p in zip(dims_pad[:-1], dims_pad[1:]):
        in_specs += [pl.BlockSpec((3 * fi_p, fo_p), lambda s: (0, 0)),
                     pl.BlockSpec((1, fo_p), lambda s: (0, 0))]

    out = pl.pallas_call(
        _fused_spatial_encoder_kernel,
        grid=(n_steps,),
        in_specs=in_specs,
        out_specs=pl.BlockSpec((1, G, fo_pad), lambda s: (s, 0, 0)),
        out_shape=jax.ShapeDtypeStruct((n_steps, G, fo_pad), jnp.float32),
        compiler_params=pltpu.CompilerParams(
            dimension_semantics=("parallel",)),
        cost_estimate=_cost_estimate(n_steps, P, G, dims_pad),
    )(jnp.asarray(a_blocks), x_blocks, jnp.asarray(pool), *folded)

    return out.reshape(n_steps * G, fo_pad)[:num_graphs, :f_out]


# ---------------------------------------------------------------------------
# Pure-JAX reference (dense full-graph S, un-folded weights) for verification
# ---------------------------------------------------------------------------
def spatial_encoder_ref(x, edge_index, batch, num_graphs, params):
    n = x.shape[0]
    src, dst = edge_index[0], edge_index[1]
    w = jnp.where(src != dst, 1.0, 0.0)
    deg = jnp.zeros((n,), jnp.float32).at[src].add(w)
    dinv = jnp.where(deg > 0, 1.0 / jnp.sqrt(deg), 0.0)
    norm = dinv[src] * w * dinv[dst]
    s = jnp.zeros((n, n), jnp.float32).at[dst, src].add(-norm)

    h = x
    for li, (wk, b) in enumerate(params):
        tx0 = h
        tx1 = s @ tx0
        tx2 = 2.0 * (s @ tx1) - tx0
        out = tx0 @ wk[0] + tx1 @ wk[1] + tx2 @ wk[2] + b
        h = jnp.maximum(out, 0.0) if li < 2 else jnp.tanh(out)
    p = (batch[None, :] == jnp.arange(num_graphs)[:, None]).astype(jnp.float32)
    return p @ h


# ---------------------------------------------------------------------------
if __name__ == "__main__":
    key = jax.random.PRNGKey(0)

    N, B = 16, 2                      # 16 nodes, 2 graphs of 8 nodes each
    init_out = 32                     # small hidden (module default is 128)
    dims = [3, init_out, init_out * 2, init_out * 4]

    # Two bidirectional ring graphs of 8 nodes each.
    edges = []
    n_g = N // B
    for g in range(B):
        off = g * n_g
        for i in range(n_g):
            j = (i + 1) % n_g
            edges.append((off + i, off + j))
            edges.append((off + j, off + i))
    edge_index = jnp.asarray(np.array(edges, dtype=np.int32).T)   # [2, E]
    batch = jnp.repeat(jnp.arange(B, dtype=jnp.int32), n_g)       # [N]

    kx = jax.random.fold_in(key, 100)
    x = jax.random.normal(kx, (N, 3), dtype=jnp.float32)

    # Deterministic glorot-uniform weights (K=3), zero bias (as in PyG ChebConv).
    params = []
    for li, (fi, fo) in enumerate(zip(dims[:-1], dims[1:])):
        kw = jax.random.fold_in(key, li + 1)
        bound = float(np.sqrt(6.0 / (fi + fo)))
        w = jax.random.uniform(kw, (3, fi, fo), minval=-bound, maxval=bound,
                               dtype=jnp.float32)
        b = jnp.zeros((1, fo), jnp.float32)
        params.append((w, b))

    out = jax.block_until_ready(spatial_encoder(x, edge_index, batch, B, params))
    ref = jax.block_until_ready(spatial_encoder_ref(x, edge_index, batch, B, params))

    assert out.shape == (B, dims[-1])
    np.testing.assert_allclose(np.asarray(out), np.asarray(ref), rtol=1e-4, atol=1e-4)

    print("KERNEL_OK")
</pallas_src>

<mosaic_0001>
module attributes {stable_mosaic.version = 11 : i64} {
  func.func @_fused_spatial_encoder_kernel(%arg0: i32, %arg1: memref<1x32x16xf32, #tpu.memory_space<vmem>>, %arg2: memref<1x16x128xf32, #tpu.memory_space<vmem>>, %arg3: memref<1x2x16xf32, #tpu.memory_space<vmem>>, %arg4: memref<384x128xf32, #tpu.memory_space<vmem>>, %arg5: memref<1x128xf32, #tpu.memory_space<vmem>>, %arg6: memref<384x128xf32, #tpu.memory_space<vmem>>, %arg7: memref<1x128xf32, #tpu.memory_space<vmem>>, %arg8: memref<384x128xf32, #tpu.memory_space<vmem>>, %arg9: memref<1x128xf32, #tpu.memory_space<vmem>>, %arg10: memref<1x2x128xf32, #tpu.memory_space<vmem>>) attributes {dimension_semantics = [#tpu.dimension_semantics<parallel>], iteration_bounds = array<i64: 1>, scalar_prefetch = 0 : i64, scratch_operands = 0 : i64, tpu.core_type = #tpu.core_type<tc>, window_params = [{transform_indices = @transform_0, window_bounds = array<i64: 1, 32, 16>}, {transform_indices = @transform_1, window_bounds = array<i64: 1, 16, 128>}, {transform_indices = @transform_2, window_bounds = array<i64: 1, 2, 16>}, {pipeline_mode = #tpu.pipeline_mode<synchronous>, transform_indices = @transform_3, window_bounds = array<i64: 384, 128>}, {pipeline_mode = #tpu.pipeline_mode<synchronous>, transform_indices = @transform_4, window_bounds = array<i64: 1, 128>}, {pipeline_mode = #tpu.pipeline_mode<synchronous>, transform_indices = @transform_5, window_bounds = array<i64: 384, 128>}, {pipeline_mode = #tpu.pipeline_mode<synchronous>, transform_indices = @transform_6, window_bounds = array<i64: 1, 128>}, {pipeline_mode = #tpu.pipeline_mode<synchronous>, transform_indices = @transform_7, window_bounds = array<i64: 384, 128>}, {pipeline_mode = #tpu.pipeline_mode<synchronous>, transform_indices = @transform_8, window_bounds = array<i64: 1, 128>}, {transform_indices = @transform_9, window_bounds = array<i64: 1, 2, 128>}]} {
    %c0 = arith.constant 0 : index
    %c0_0 = arith.constant 0 : index
    %c0_1 = arith.constant 0 : index
    %0 = vector.load %arg1[%c0, %c0_0, %c0_1] : memref<1x32x16xf32, #tpu.memory_space<vmem>>, vector<1x32x16xf32>
    %1 = vector.shape_cast %0 : vector<1x32x16xf32> to vector<32x16xf32>
    %c0_2 = arith.constant 0 : index
    %c0_3 = arith.constant 0 : index
    %c0_4 = arith.constant 0 : index
    %2 = vector.load %arg3[%c0_2, %c0_3, %c0_4] : memref<1x2x16xf32, #tpu.memory_space<vmem>>, vector<1x2x16xf32>
    %3 = vector.shape_cast %2 : vector<1x2x16xf32> to vector<2x16xf32>
    %c0_5 = arith.constant 0 : index
    %c0_6 = arith.constant 0 : index
    %c0_7 = arith.constant 0 : index
    %4 = vector.load %arg2[%c0_5, %c0_6, %c0_7] : memref<1x16x128xf32, #tpu.memory_space<vmem>>, vector<1x16x128xf32>
    %5 = vector.shape_cast %4 : vector<1x16x128xf32> to vector<16x128xf32>
    %cst = arith.constant dense<0.000000e+00> : vector<32x128xf32>
    %6 = tpu.matmul %1, %5, %cst {dimension_numbers = #tpu.dot_dimension_numbers<[1], [0], [0], [1], [0, 0, 1, 1], [], []>} : vector<32x16xf32>, vector<16x128xf32>, vector<32x128xf32> -> vector<32x128xf32>
    %7 = vector.extract_strided_slice %6 {offsets = [0, 0], sizes = [16, 128], strides = [1, 1]} : vector<32x128xf32> to vector<16x128xf32>
    %8 = vector.extract_strided_slice %6 {offsets = [16, 0], sizes = [16, 128], strides = [1, 1]} : vector<32x128xf32> to vector<16x128xf32>
    %9 = tpu.concatenate %5, %7, %8 in 1 : vector<16x128xf32>, vector<16x128xf32>, vector<16x128xf32> -> vector<16x384xf32>
    %c0_8 = arith.constant 0 : index
    %c0_9 = arith.constant 0 : index
    %10 = vector.load %arg4[%c0_8, %c0_9] : memref<384x128xf32, #tpu.memory_space<vmem>>, vector<384x128xf32>
    %cst_10 = arith.constant dense<0.000000e+00> : vector<16x128xf32>
    %11 = tpu.matmul %9, %10, %cst_10 {dimension_numbers = #tpu.dot_dimension_numbers<[1], [0], [0], [1], [0, 0, 1, 1], [], []>} : vector<16x384xf32>, vector<384x128xf32>, vector<16x128xf32> -> vector<16x128xf32>
    %c0_11 = arith.constant 0 : index
    %c0_12 = arith.constant 0 : index
    %12 = vector.load %arg5[%c0_11, %c0_12] : memref<1x128xf32, #tpu.memory_space<vmem>>, vector<1x128xf32>
    %13 = vector.broadcast %12 : vector<1x128xf32> to vector<16x128xf32>
    %14 = arith.addf %11, %13 : vector<16x128xf32>
    %cst_13 = arith.constant 0.000000e+00 : f32
    %15 = vector.broadcast %cst_13 : f32 to vector<16x128xf32>
    %16 = arith.maximumf %14, %15 : vector<16x128xf32>
    %cst_14 = arith.constant dense<0.000000e+00> : vector<32x128xf32>
    %17 = tpu.matmul %1, %16, %cst_14 {dimension_numbers = #tpu.dot_dimension_numbers<[1], [0], [0], [1], [0, 0, 1, 1], [], []>} : vector<32x16xf32>, vector<16x128xf32>, vector<32x128xf32> -> vector<32x128xf32>
    %18 = vector.extract_strided_slice %17 {offsets = [0, 0], sizes = [16, 128], strides = [1, 1]} : vector<32x128xf32> to vector<16x128xf32>
    %19 = vector.extract_strided_slice %17 {offsets = [16, 0], sizes = [16, 128], strides = [1, 1]} : vector<32x128xf32> to vector<16x128xf32>
    %20 = tpu.concatenate %16, %18, %19 in 1 : vector<16x128xf32>, vector<16x128xf32>, vector<16x128xf32> -> vector<16x384xf32>
    %c0_15 = arith.constant 0 : index
    %c0_16 = arith.constant 0 : index
    %21 = vector.load %arg6[%c0_15, %c0_16] : memref<384x128xf32, #tpu.memory_space<vmem>>, vector<384x128xf32>
    %cst_17 = arith.constant dense<0.000000e+00> : vector<16x128xf32>
    %22 = tpu.matmul %20, %21, %cst_17 {dimension_numbers = #tpu.dot_dimension_numbers<[1], [0], [0], [1], [0, 0, 1, 1], [], []>} : vector<16x384xf32>, vector<384x128xf32>, vector<16x128xf32> -> vector<16x128xf32>
    %c0_18 = arith.constant 0 : index
    %c0_19 = arith.constant 0 : index
    %23 = vector.load %arg7[%c0_18, %c0_19] : memref<1x128xf32, #tpu.memory_space<vmem>>, vector<1x128xf32>
    %24 = vector.broadcast %23 : vector<1x128xf32> to vector<16x128xf32>
    %25 = arith.addf %22, %24 : vector<16x128xf32>
    %cst_20 = arith.constant 0.000000e+00 : f32
    %26 = vector.broadcast %cst_20 : f32 to vector<16x128xf32>
    %27 = arith.maximumf %25, %26 : vector<16x128xf32>
    %cst_21 = arith.constant dense<0.000000e+00> : vector<32x128xf32>
    %28 = tpu.matmul %1, %27, %cst_21 {dimension_numbers = #tpu.dot_dimension_numbers<[1], [0], [0], [1], [0, 0, 1, 1], [], []>} : vector<32x16xf32>, vector<16x128xf32>, vector<32x128xf32> -> vector<32x128xf32>
    %29 = vector.extract_strided_slice %28 {offsets = [0, 0], sizes = [16, 128], strides = [1, 1]} : vector<32x128xf32> to vector<16x128xf32>
    %30 = vector.extract_strided_slice %28 {offsets = [16, 0], sizes = [16, 128], strides = [1, 1]} : vector<32x128xf32> to vector<16x128xf32>
    %31 = tpu.concatenate %27, %29, %30 in 1 : vector<16x128xf32>, vector<16x128xf32>, vector<16x128xf32> -> vector<16x384xf32>
    %c0_22 = arith.constant 0 : index
    %c0_23 = arith.constant 0 : index
    %32 = vector.load %arg8[%c0_22, %c0_23] : memref<384x128xf32, #tpu.memory_space<vmem>>, vector<384x128xf32>
    %cst_24 = arith.constant dense<0.000000e+00> : vector<16x128xf32>
    %33 = tpu.matmul %31, %32, %cst_24 {dimension_numbers = #tpu.dot_dimension_numbers<[1], [0], [0], [1], [0, 0, 1, 1], [], []>} : vector<16x384xf32>, vector<384x128xf32>, vector<16x128xf32> -> vector<16x128xf32>
    %c0_25 = arith.constant 0 : index
    %c0_26 = arith.constant 0 : index
    %34 = vector.load %arg9[%c0_25, %c0_26] : memref<1x128xf32, #tpu.memory_space<vmem>>, vector<1x128xf32>
    %35 = vector.broadcast %34 : vector<1x128xf32> to vector<16x128xf32>
    %36 = arith.addf %33, %35 : vector<16x128xf32>
    %37 = math.tanh %36 : vector<16x128xf32>
    %cst_27 = arith.constant dense<0.000000e+00> : vector<2x128xf32>
    %38 = tpu.matmul %3, %37, %cst_27 {dimension_numbers = #tpu.dot_dimension_numbers<[1], [0], [0], [1], [0, 0, 1, 1], [], []>} : vector<2x16xf32>, vector<16x128xf32>, vector<2x128xf32> -> vector<2x128xf32>
    %c0_28 = arith.constant 0 : index
    %c0_29 = arith.constant 0 : index
    %c0_30 = arith.constant 0 : index
    %39 = vector.load %arg10[%c0_28, %c0_29, %c0_30] : memref<1x2x128xf32, #tpu.memory_space<vmem>>, vector<1x2x128xf32>
    %40 = vector.shape_cast %39 : vector<1x2x128xf32> to vector<2x128xf32>
    %41 = vector.shape_cast %38 : vector<2x128xf32> to vector<1x2x128xf32>
    tpu.vector_store %arg10[%c0_28, %c0_29, %c0_30], %41 {strides = array<i32>} : memref<1x2x128xf32, #tpu.memory_space<vmem>>, vector<1x2x128xf32>,
    return
  }
  func.func @transform_0(%arg0: i32) -> (i32, i32, i32) {
    %c0_i32 = arith.constant 0 : i32
    %c0_i32_0 = arith.constant 0 : i32
    %c0_i32_1 = arith.constant 0 : i32
    return %arg0, %c0_i32, %c0_i32_0 : i32, i32, i32
  }
  func.func @transform_1(%arg0: i32) -> (i32, i32, i32) {
    %c0_i32 = arith.constant 0 : i32
    %c0_i32_0 = arith.constant 0 : i32
    %c0_i32_1 = arith.constant 0 : i32
    return %arg0, %c0_i32, %c0_i32_0 : i32, i32, i32
  }
  func.func @transform_2(%arg0: i32) -> (i32, i32, i32) {
    %c0_i32 = arith.constant 0 : i32
    %c0_i32_0 = arith.constant 0 : i32
    %c0_i32_1 = arith.constant 0 : i32
    return %arg0, %c0_i32, %c0_i32_0 : i32, i32, i32
  }
  func.func @transform_3(%arg0: i32) -> (i32, i32) {
    %c0_i32 = arith.constant 0 : i32
    %c0_i32_0 = arith.constant 0 : i32
    %c0_i32_1 = arith.constant 0 : i32
    return %c0_i32, %c0_i32_0 : i32, i32
  }
  func.func @transform_4(%arg0: i32) -> (i32, i32) {
    %c0_i32 = arith.constant 0 : i32
    %c0_i32_0 = arith.constant 0 : i32
    %c0_i32_1 = arith.constant 0 : i32
    return %c0_i32, %c0_i32_0 : i32, i32
  }
  func.func @transform_5(%arg0: i32) -> (i32, i32) {
    %c0_i32 = arith.constant 0 : i32
    %c0_i32_0 = arith.constant 0 : i32
    %c0_i32_1 = arith.constant 0 : i32
    return %c0_i32, %c0_i32_0 : i32, i32
  }
  func.func @transform_6(%arg0: i32) -> (i32, i32) {
    %c0_i32 = arith.constant 0 : i32
    %c0_i32_0 = arith.constant 0 : i32
    %c0_i32_1 = arith.constant 0 : i32
    return %c0_i32, %c0_i32_0 : i32, i32
  }
  func.func @transform_7(%arg0: i32) -> (i32, i32) {
    %c0_i32 = arith.constant 0 : i32
    %c0_i32_0 = arith.constant 0 : i32
    %c0_i32_1 = arith.constant 0 : i32
    return %c0_i32, %c0_i32_0 : i32, i32
  }
  func.func @transform_8(%arg0: i32) -> (i32, i32) {
    %c0_i32 = arith.constant 0 : i32
    %c0_i32_0 = arith.constant 0 : i32
    %c0_i32_1 = arith.constant 0 : i32
    return %c0_i32, %c0_i32_0 : i32, i32
  }
  func.func @transform_9(%arg0: i32) -> (i32, i32, i32) {
    %c0_i32 = arith.constant 0 : i32
    %c0_i32_0 = arith.constant 0 : i32
    %c0_i32_1 = arith.constant 0 : i32
    return %arg0, %c0_i32, %c0_i32_0 : i32, i32, i32
  }
}

</mosaic_0001>

<bundles_post_ra>
// kernel: tpu_custom_call.1
= control target key start
LH: loop header
LB: loop body
LE: loop exit
PB: predicated region body
PF: predicated region fallthrough
CT: control target
= control target key end

     0   :  { %14 = vsyncpa [#allocation3], 0  ;;  %s1668_s0 = inlined_call_operand.vmem [shape: f32[1,32,16], index: 0, kind: input, shape index: {}]   ;;  %s1669_s1 = inlined_call_operand.vmem [shape: f32[1,16,128], index: 1, kind: input, shape index: {}]   ;;  %s1670_s2 = inlined_call_operand.vmem [shape: f32[1,2,16], index: 2, kind: input, shape index: {}]   ;;  %s1671_s3 = inlined_call_operand.hbm [shape: f32[384,128], index: 3, kind: input, shape index: {}]   ;;  %s1672_s4 = inlined_call_operand.vmem [shape: f32[1,128], index: 4, kind: input, shape index: {}]   ;;  %s1673_s5 = inlined_call_operand.hbm [shape: f32[384,128], index: 5, kind: input, shape index: {}]   ;;  %s1674_s6 = inlined_call_operand.vmem [shape: f32[1,128], index: 6, kind: input, shape index: {}]   ;;  %s1675_s7 = inlined_call_operand.hbm [shape: f32[384,128], index: 7, kind: input, shape index: {}]   ;;  %s1676_s8 = inlined_call_operand.vmem [shape: f32[1,128], index: 8, kind: input, shape index: {}]   ;;  %s1677_s9 = inlined_call_operand.hbm [shape: f32[1,2,128], index: 9, kind: output, shape index: {}]  }
   0x1   :  { %15 = vsyncpa [#allocation6], 0 }
   0x2   :  { %16 = vsyncpa [#allocation4], 0  ;;  %s1505_s30 = smov [#allocation5]   ;;  %s1506_s11 = smov [#allocation2]  }
   0x3   :  { %s42_s10 = sshll.u32 %s1505_s30, 4  ;;  %s28_s12 = sshll.u32 %s1506_s11, 4  ;;  %s43_s10 = int_to_ptr.vmem [resolvable:$true] %s42_s10  ;;  %s29_s12 = int_to_ptr.vmem [resolvable:$true] %s28_s12 }
   0x4   :  { %s1427_s13 = scalar_lea.vmem %s43_s10, 6144  ;;  %p1432_p1 = scmp.lt.s32.totalorder %s43_s10, %s43_s10 }
   0x5   :  { %p1428_p0 = scmp.ne.s32.totalorder %s43_s10, %s1427_s13  ;;  %p1433_p2 = scmp.lt.s32.totalorder %s1427_s13, %s1427_s13 }
   0x7   :  { %p1434_p3 = por %p1433_p2, %p1432_p1 }
   0x9   :  { %p1435_p4 = pnand %p1434_p3, %p1428_p0 }
   0xb   :  { %1438 = shalt.err (!%p1435_p4)
}
   0xc   :  { %s1507_s14 = smov 128   ;;  %s1508_s15 = smov 8  }
   0xd   :  { %48 = dma.hbm_to_vmem [thread:$0]  %s1673_s5, 6144, %s43_s10, [#allocation6], %s1507_s14, %s1507_s14, %s1508_s15  }
   0xe   :  { %s1447_s18 = scalar_lea.vmem %s29_s12, 6144  ;;  %p1452_p6 = scmp.lt.s32.totalorder %s29_s12, %s29_s12 }
   0xf   :  { %p1448_p5 = scmp.ne.s32.totalorder %s29_s12, %s1447_s18  ;;  %p1453_p7 = scmp.lt.s32.totalorder %s1447_s18, %s1447_s18 }
  0x11   :  { %p1454_p8 = por %p1453_p7, %p1452_p6 }
  0x13   :  { %p1455_p9 = pnand %p1454_p8, %p1448_p5 }
  0x15   :  { %1458 = shalt.err (!%p1455_p9)
}
  0x16   :  { %34 = dma.hbm_to_vmem [thread:$0]  %s1671_s3, 6144, %s29_s12, [#allocation3], %s1507_s14, %s1507_s14, %s1508_s15  }
  0x17   :  { %s1509_s21 = smov [#allocation7]  }
  0x18   :  { %s56_s22 = sshll.u32 %s1509_s21, 4  ;;  %s57_s22 = int_to_ptr.vmem [resolvable:$true] %s56_s22 }
  0x19   :  { %s1467_s23 = scalar_lea.vmem %s57_s22, 6144  ;;  %p1472_p11 = scmp.lt.s32.totalorder %s57_s22, %s57_s22 }
  0x1a   :  { %p1468_p10 = scmp.ne.s32.totalorder %s57_s22, %s1467_s23  ;;  %p1473_p12 = scmp.lt.s32.totalorder %s1467_s23, %s1467_s23 }
  0x1c   :  { %p1474_p13 = por %p1473_p12, %p1472_p11 }
  0x1e   :  { %p1475_p0 = pnand %p1474_p13, %p1468_p10 }
  0x20   :  { %1478 = shalt.err (!%p1475_p0)
}
  0x21   :  { %62 = dma.hbm_to_vmem [thread:$0]  %s1675_s7, 6144, %s57_s22, [#allocation6], %s1507_s14, %s1507_s14, %s1508_s15  }
  0x22   :  { %1499 = dma.done.wait [#allocation3], 6144  }
  0x23   :  { %1500 = vsyncadd [#allocation3], 4294961152 }
  0x24   :  { %1501 = dma.done.wait [#allocation6], 12288  }
  0x25   :  { %1502 = vsyncadd [#allocation6], 4294955008  ;;  %vm81_vm0 = vcmask 130048   ;;  %v1575_v0 = vld [vmem:[%s1669_s1 + $0x8] sm:$0xff]  ;;  %v1580_v1 = vld [vmem:[%s1669_s1] sm:$0xff]  ;;  %vm1511_vm1 = vmmov 0  }
  0x26   :  { %v1585_v2 = vld [vmem:[%s1668_s0] sm:$0xff]  ;;  %1265 = vmatprep.subr.mxu0 %v1575_v0  ;;  %v1593_v3 = vld [vmem:[%s1668_s0 + $0x8] sm:$0xff]  ;;  %v210_v4 = vld [vmem:[#allocation2 + $0xf8] sm:$0xff] }
  0x27   :  { %1269 = vmatprep.mubr.msk.f32.mxu0 %vm81_vm0, %v1585_v2  ;;  %1266 = vmatpush3.msra.mxu0 %v1575_v0  ;;  %v194_v5 = vld [vmem:[#allocation2 + $0x78] sm:$0xff]  ;;  %v209_v6 = vld [vmem:[#allocation2 + $0xf0] sm:$0xff]  ;;  %v208_v9 = vld [vmem:[#allocation2 + $0xe8] sm:$0xff] }
  0x28   :  { %1267 = vmatprep.subr.mxu0 %v1580_v1  ;;  %v1600_v7 = vld [vmem:[%s1668_s0 + $0x10] sm:$0xff]  ;;  %1082 = vmatprep.subr.mxu1 %v210_v4  ;;  %v226_v10 = vld [vmem:[#allocation2 + $0x178] sm:$0xff]  ;;  %v192_v11 = vld [vmem:[#allocation2 + $0x68] sm:$0xff] }
  0x29   :  { %v193_v8 = vld [vmem:[#allocation2 + $0x70] sm:$0xff]  ;;  %1268 = vmatpush3.msra.mxu0 %v1580_v1  ;;  %1083 = vmatpush3.msra.mxu1 %v194_v5  ;;  %v1610_v12 = vld [vmem:[%s1668_s0 + $0x18] sm:$0xff]  ;;  %v207_v13 = vld [vmem:[#allocation2 + $0xe0] sm:$0xff] }
  0x2a   :  { %1270 = vmatmul.mubr.msk.f32.vlgmr.msra.gmra.mxu0 %vm81_vm0, %v1593_v3  ;;  %1084 = vmatprep.subr.mxu1 %v209_v6  ;;  %v225_v14 = vld [vmem:[#allocation2 + $0x170] sm:$0xff]  ;;  %v191_v15 = vld [vmem:[#allocation2 + $0x60] sm:$0xff]  ;;  %v206_v16 = vld [vmem:[#allocation2 + $0xd8] sm:$0xff] }
  0x2b   :  { %1272 = vmatprep.mubr.msk.f32.mxu0 %vm81_vm0, %v1600_v7  ;;  %1085 = vmatpush3.msra.mxu1 %v193_v8  ;;  %v224_v17 = vld [vmem:[#allocation2 + $0x168] sm:$0xff]  ;;  %v190_v18 = vld [vmem:[#allocation2 + $0x58] sm:$0xff]  ;;  %v205_v19 = vld [vmem:[#allocation2 + $0xd0] sm:$0xff] }
  0x2c   :  { %1086 = vmatprep.subr.mxu1 %v208_v9  ;;  %1275 = vmatprep.subr.mxu0 %v226_v10  ;;  %v223_v20 = vld [vmem:[#allocation2 + $0x160] sm:$0xff]  ;;  %v189_v21 = vld [vmem:[#allocation2 + $0x50] sm:$0xff]  ;;  %v204_v22 = vld [vmem:[#allocation2 + $0xc8] sm:$0xff] }
  0x2d   :  { %1087 = vmatpush3.msra.mxu1 %v192_v11  ;;  %1276 = vmatpush3.msra.mxu0 %v226_v10  ;;  %v222_v23 = vld [vmem:[#allocation2 + $0x158] sm:$0xff]  ;;  %v188_v24 = vld [vmem:[#allocation2 + $0x48] sm:$0xff]  ;;  %v203_v25 = vld [vmem:[#allocation2 + $0xc0] sm:$0xff] }
  0x2e   :  { %1273 = vmatmul.mubr.msk.f32.gmra.mxu0 %vm81_vm0, %v1610_v12  ;;  %1088 = vmatprep.subr.mxu1 %v207_v13  ;;  %v221_v26 = vld [vmem:[#allocation2 + $0x150] sm:$0xff]  ;;  %v187_v27 = vld [vmem:[#allocation2 + $0x40] sm:$0xff]  ;;  %v202_v28 = vld [vmem:[#allocation2 + $0xb8] sm:$0xff] }
  0x2f   :  { %1277 = vmatprep.subr.mxu0 %v225_v14  ;;  %1089 = vmatpush3.msra.mxu1 %v191_v15  ;;  %v220_v29 = vld [vmem:[#allocation2 + $0x148] sm:$0xff]  ;;  %v186_v30 = vld [vmem:[#allocation2 + $0x38] sm:$0xff]  ;;  %v201_v31 = vld [vmem:[#allocation2 + $0xb0] sm:$0xff] }
  0x30   :  { %1278 = vmatpush3.msra.mxu0 %v225_v14  ;;  %1090 = vmatprep.subr.mxu1 %v206_v16  ;;  %v219_v32 = vld [vmem:[#allocation2 + $0x140] sm:$0xff]  ;;  %v185_v33 = vld [vmem:[#allocation2 + $0x30] sm:$0xff]  ;;  %v200_v34 = vld [vmem:[#allocation2 + $0xa8] sm:$0xff] }
  0x31   :  { %1279 = vmatprep.subr.mxu0 %v224_v17  ;;  %1091 = vmatpush3.msra.mxu1 %v190_v18  ;;  %v218_v35 = vld [vmem:[#allocation2 + $0x138] sm:$0xff]  ;;  %v184_v36 = vld [vmem:[#allocation2 + $0x28] sm:$0xff]  ;;  %v199_v37 = vld [vmem:[#allocation2 + $0xa0] sm:$0xff] }
  0x32   :  { %1280 = vmatpush3.msra.mxu0 %v224_v17  ;;  %1092 = vmatprep.subr.mxu1 %v205_v19  ;;  %v217_v38 = vld [vmem:[#allocation2 + $0x130] sm:$0xff]  ;;  %v183_v39 = vld [vmem:[#allocation2 + $0x20] sm:$0xff]  ;;  %v198_v40 = vld [vmem:[#allocation2 + $0x98] sm:$0xff] }
  0x33   :  { %1281 = vmatprep.subr.mxu0 %v223_v20  ;;  %1093 = vmatpush3.msra.mxu1 %v189_v21  ;;  %v216_v41 = vld [vmem:[#allocation2 + $0x128] sm:$0xff]  ;;  %v182_v42 = vld [vmem:[#allocation2 + $0x18] sm:$0xff]  ;;  %v197_v43 = vld [vmem:[#allocation2 + $0x90] sm:$0xff] }
  0x34   :  { %1282 = vmatpush3.msra.mxu0 %v223_v20  ;;  %1094 = vmatprep.subr.mxu1 %v204_v22  ;;  %v215_v44 = vld [vmem:[#allocation2 + $0x120] sm:$0xff]  ;;  %v181_v45 = vld [vmem:[#allocation2 + $0x10] sm:$0xff]  ;;  %v196_v46 = vld [vmem:[#allocation2 + $0x88] sm:$0xff] }
  0x35   :  { %1283 = vmatprep.subr.mxu0 %v222_v23  ;;  %1095 = vmatpush3.msra.mxu1 %v188_v24  ;;  %v214_v47 = vld [vmem:[#allocation2 + $0x118] sm:$0xff]  ;;  %v180_v48 = vld [vmem:[#allocation2 + $0x8] sm:$0xff]  ;;  %v195_v49 = vld [vmem:[#allocation2 + $0x80] sm:$0xff] }
  0x36   :  { %1284 = vmatpush3.msra.mxu0 %v222_v23  ;;  %1096 = vmatprep.subr.mxu1 %v203_v25  ;;  %v213_v50 = vld [vmem:[#allocation2 + $0x110] sm:$0xff]  ;;  %v179_v51 = vld [vmem:[#allocation2] sm:$0xff]  ;;  %v212_v52 = vld [vmem:[#allocation2 + $0x108] sm:$0xff] }
  0x37   :  { %1285 = vmatprep.subr.mxu0 %v221_v26  ;;  %1097 = vmatpush3.msra.mxu1 %v187_v27  ;;  %v211_v53 = vld [vmem:[#allocation2 + $0x100] sm:$0xff]  ;;  %v502_v58 = vld [vmem:[#allocation5 + $0xf8] sm:$0xff]  ;;  %v501_v60 = vld [vmem:[#allocation5 + $0xf0] sm:$0xff] }
  0x38   :  { %1286 = vmatpush3.msra.mxu0 %v221_v26  ;;  %1098 = vmatprep.subr.mxu1 %v202_v28  ;;  %v486_v59 = vld [vmem:[#allocation5 + $0x78] sm:$0xff]  ;;  %v485_v61 = vld [vmem:[#allocation5 + $0x70] sm:$0xff]  ;;  %v500_v62 = vld [vmem:[#allocation5 + $0xe8] sm:$0xff] }
  0x39   :  { %1287 = vmatprep.subr.mxu0 %v220_v29  ;;  %1099 = vmatpush3.msra.mxu1 %v186_v30  ;;  %v484_v63 = vld [vmem:[#allocation5 + $0x68] sm:$0xff]  ;;  %v483_v4 = vld [vmem:[#allocation5 + $0x60] sm:$0xff]  ;;  %v498_v5 = vld [vmem:[#allocation5 + $0xd8] sm:$0xff] }
  0x3a   :  { %1288 = vmatpush3.msra.mxu0 %v220_v29  ;;  %1100 = vmatprep.subr.mxu1 %v201_v31  ;;  %v497_v6 = vld [vmem:[#allocation5 + $0xd0] sm:$0xff]  ;;  %v496_v9 = vld [vmem:[#allocation5 + $0xc8] sm:$0xff]  ;;  %v495_v11 = vld [vmem:[#allocation5 + $0xc0] sm:$0xff] }
  0x3b   :  { %1289 = vmatprep.subr.mxu0 %v219_v32  ;;  %1101 = vmatpush3.msra.mxu1 %v185_v33  ;;  %v481_v8 = vld [vmem:[#allocation5 + $0x50] sm:$0xff]  ;;  %v480_v10 = vld [vmem:[#allocation5 + $0x48] sm:$0xff]  ;;  %v479_v13 = vld [vmem:[#allocation5 + $0x40] sm:$0xff] }
  0x3c   :  { %1290 = vmatpush3.msra.mxu0 %v219_v32  ;;  %1102 = vmatprep.subr.mxu1 %v200_v34  ;;  %v494_v14 = vld [vmem:[#allocation5 + $0xb8] sm:$0xff]  ;;  %v493_v16 = vld [vmem:[#allocation5 + $0xb0] sm:$0xff]  ;;  %v492_v18 = vld [vmem:[#allocation5 + $0xa8] sm:$0xff] }
  0x3d   :  { %1291 = vmatprep.subr.mxu0 %v218_v35  ;;  %1103 = vmatpush3.msra.mxu1 %v184_v36  ;;  %v478_v15 = vld [vmem:[#allocation5 + $0x38] sm:$0xff]  ;;  %v477_v17 = vld [vmem:[#allocation5 + $0x30] sm:$0xff]  ;;  %v476_v19 = vld [vmem:[#allocation5 + $0x28] sm:$0xff] }
  0x3e   :  { %1292 = vmatpush3.msra.mxu0 %v218_v35  ;;  %1104 = vmatprep.subr.mxu1 %v199_v37  ;;  %v491_v20 = vld [vmem:[#allocation5 + $0xa0] sm:$0xff]  ;;  %v490_v22 = vld [vmem:[#allocation5 + $0x98] sm:$0xff]  ;;  %v489_v24 = vld [vmem:[#allocation5 + $0x90] sm:$0xff] }
  0x3f   :  { %1293 = vmatprep.subr.mxu0 %v217_v38  ;;  %1105 = vmatpush3.msra.mxu1 %v183_v39  ;;  %v475_v21 = vld [vmem:[#allocation5 + $0x20] sm:$0xff]  ;;  %v474_v23 = vld [vmem:[#allocation5 + $0x18] sm:$0xff]  ;;  %v473_v25 = vld [vmem:[#allocation5 + $0x10] sm:$0xff] }
  0x40   :  { %1294 = vmatpush3.msra.mxu0 %v217_v38  ;;  %1106 = vmatprep.subr.mxu1 %v198_v40  ;;  %v1064_v31 = vld [vmem:[%s1672_s4] ss:$0 sm:$0xff] }
  0x41   :  { %1295 = vmatprep.subr.mxu0 %v216_v41  ;;  %1107 = vmatpush3.msra.mxu1 %v182_v42  ;;  %v517_v42 = vld [vmem:[#allocation5 + $0x170] sm:$0xff] }
  0x42   :  { %1296 = vmatpush3.msra.mxu0 %v216_v41  ;;  %1108 = vmatprep.subr.mxu1 %v197_v43  ;;  %v518_v41 = vld [vmem:[#allocation5 + $0x178] sm:$0xff]  ;;  %v516_v43 = vld [vmem:[#allocation5 + $0x168] sm:$0xff] }
  0x43   :  { %1297 = vmatprep.subr.mxu0 %v215_v44  ;;  %1109 = vmatpush3.msra.mxu1 %v181_v45  ;;  %v514_v45 = vld [vmem:[#allocation5 + $0x158] sm:$0xff] }
  0x44   :  { %1298 = vmatpush3.msra.mxu0 %v215_v44  ;;  %1110 = vmatprep.subr.mxu1 %v196_v46  ;;  %v515_v44 = vld [vmem:[#allocation5 + $0x160] sm:$0xff]  ;;  %v513_v46 = vld [vmem:[#allocation5 + $0x150] sm:$0xff] }
  0x45   :  { %1299 = vmatprep.subr.mxu0 %v214_v47  ;;  %1111 = vmatpush3.msra.mxu1 %v180_v48  ;;  %v511_v48 = vld [vmem:[#allocation5 + $0x140] sm:$0xff] }
  0x46   :  { %1300 = vmatpush3.msra.mxu0 %v214_v47  ;;  %1112 = vmatprep.subr.mxu1 %v195_v49  ;;  %v512_v47 = vld [vmem:[#allocation5 + $0x148] sm:$0xff]  ;;  %v510_v49 = vld [vmem:[#allocation5 + $0x138] sm:$0xff] }
  0x47   :  { %1301 = vmatprep.subr.mxu0 %v213_v50  ;;  %1113 = vmatpush3.msra.mxu1 %v179_v51  ;;  %v508_v51 = vld [vmem:[#allocation5 + $0x128] sm:$0xff] }
  0x48   :  { %1302 = vmatpush3.msra.mxu0 %v213_v50  ;;  %1144 = vmatprep.subr.mxu1 %v502_v58  ;;  %v509_v50 = vld [vmem:[#allocation5 + $0x130] sm:$0xff]  ;;  %v471_v58 = vld [vmem:[#allocation5] sm:$0xff] }
  0x49   :  { %1303 = vmatprep.subr.mxu0 %v212_v52 }
  0x4a   :  { %1304 = vmatpush3.msra.mxu0 %v212_v52  ;;  %v507_v52 = vld [vmem:[#allocation5 + $0x120] sm:$0xff] }
  0x4b   :  { %1305 = vmatprep.subr.mxu0 %v211_v53 }
  0x4c   :  { %1306 = vmatpush3.msra.mxu0 %v211_v53  ;;  %v488_v53 = vld [vmem:[#allocation5 + $0x88] sm:$0xff] }
  0xea   :  { %v1271_v54 = vpop.f32.mrf.mxu0 }
  0xec   :  { %v160_v55 = vpop.f32.mrf.mxu0 }
  0xed   :  { %298 = vmatprep.mubr.f32.mxu1 %v160_v55  ;;  %v472_v55 = vld [vmem:[#allocation5 + $0x8] sm:$0xff] }
  0xee   :  { %v1274_v56 = vpop.f32.mrf.mxu0  ;;  %299 = vmatmul.mubr.f32.vlgmr.msra.gmra.mxu1 %v1580_v1  ;;  %v499_v1 = vld [vmem:[#allocation5 + $0xe0] sm:$0xff] }
  0xef   :  { %303 = vmatprep.mubr.f32.mxu1 %v1271_v54  ;;  %1145 = vmatpush3.msra.mxu1 %v486_v59  ;;  %v506_v54 = vld [vmem:[#allocation5 + $0x118] sm:$0xff]  ;;  %v504_v59 = vld [vmem:[#allocation5 + $0x108] sm:$0xff] }
  0xf0   :  { %v170_v57 = vpop.f32.mrf.mxu0  ;;  %1146 = vmatprep.subr.mxu1 %v501_v60  ;;  %v503_v60 = vld [vmem:[#allocation5 + $0x100] sm:$0xff] }
  0xf1   :  { %1307 = vmatprep.mubr.f32.mxu0 %v170_v57  ;;  %1147 = vmatpush3.msra.mxu1 %v485_v61  ;;  %v505_v57 = vld [vmem:[#allocation5 + $0x110] sm:$0xff] }
  0xf2   :  { %304 = vmatmul.mubr.f32.gmra.mxu1 %v1575_v0  ;;  %1308 = vmatmul.mubr.f32.vlgmr.msra.gmra.mxu0 %v1274_v56  ;;  %v482_v0 = vld [vmem:[#allocation5 + $0x58] sm:$0xff]  ;;  %v487_v56 = vld [vmem:[#allocation5 + $0x80] sm:$0xff] }
  0xf3   :  { %1314 = vmatprep.mubr.msk.f32.mxu0 %vm81_vm0, %v1585_v2  ;;  %1148 = vmatprep.subr.mxu1 %v500_v62 }
  0xf4   :  { %1149 = vmatpush3.msra.mxu1 %v484_v63 }
  0xf5   :  { %1150 = vmatprep.subr.mxu1 %v499_v1 }
  0xf6   :  { %1151 = vmatpush3.msra.mxu1 %v483_v4  ;;  %v794_v4 = vld [vmem:[#allocation7 + $0xf8] sm:$0xff] }
  0xf7   :  { %1152 = vmatprep.subr.mxu1 %v498_v5  ;;  %v778_v5 = vld [vmem:[#allocation7 + $0x78] sm:$0xff] }
  0xf8   :  { %1153 = vmatpush3.msra.mxu1 %v482_v0  ;;  %v793_v0 = vld [vmem:[#allocation7 + $0xf0] sm:$0xff] }
  0xf9   :  { %1154 = vmatprep.subr.mxu1 %v497_v6  ;;  %v777_v6 = vld [vmem:[#allocation7 + $0x70] sm:$0xff] }
  0xfa   :  { %1155 = vmatpush3.msra.mxu1 %v481_v8  ;;  %v792_v8 = vld [vmem:[#allocation7 + $0xe8] sm:$0xff] }
  0xfb   :  { %1156 = vmatprep.subr.mxu1 %v496_v9  ;;  %v776_v9 = vld [vmem:[#allocation7 + $0x68] sm:$0xff] }
  0xfc   :  { %1157 = vmatpush3.msra.mxu1 %v480_v10  ;;  %v791_v10 = vld [vmem:[#allocation7 + $0xe0] sm:$0xff] }
  0xfd   :  { %1158 = vmatprep.subr.mxu1 %v495_v11  ;;  %v775_v11 = vld [vmem:[#allocation7 + $0x60] sm:$0xff] }
  0xfe   :  { %1159 = vmatpush3.msra.mxu1 %v479_v13  ;;  %v790_v13 = vld [vmem:[#allocation7 + $0xd8] sm:$0xff] }
  0xff   :  { %1160 = vmatprep.subr.mxu1 %v494_v14  ;;  %v774_v14 = vld [vmem:[#allocation7 + $0x58] sm:$0xff] }
 0x100   :  { %1161 = vmatpush3.msra.mxu1 %v478_v15  ;;  %v789_v15 = vld [vmem:[#allocation7 + $0xd0] sm:$0xff] }
 0x101   :  { %1162 = vmatprep.subr.mxu1 %v493_v16  ;;  %v788_v16 = vld [vmem:[#allocation7 + $0xc8] sm:$0xff] }
 0x102   :  { %1163 = vmatpush3.msra.mxu1 %v477_v17  ;;  %v772_v17 = vld [vmem:[#allocation7 + $0x48] sm:$0xff] }
 0x103   :  { %1164 = vmatprep.subr.mxu1 %v492_v18  ;;  %v787_v18 = vld [vmem:[#allocation7 + $0xc0] sm:$0xff] }
 0x104   :  { %1165 = vmatpush3.msra.mxu1 %v476_v19  ;;  %v771_v19 = vld [vmem:[#allocation7 + $0x40] sm:$0xff] }
 0x105   :  { %1166 = vmatprep.subr.mxu1 %v491_v20  ;;  %v786_v20 = vld [vmem:[#allocation7 + $0xb8] sm:$0xff] }
 0x106   :  { %1167 = vmatpush3.msra.mxu1 %v475_v21  ;;  %v770_v21 = vld [vmem:[#allocation7 + $0x38] sm:$0xff] }
 0x107   :  { %1168 = vmatprep.subr.mxu1 %v490_v22  ;;  %v785_v22 = vld [vmem:[#allocation7 + $0xb0] sm:$0xff] }
 0x108   :  { %1169 = vmatpush3.msra.mxu1 %v474_v23  ;;  %v769_v23 = vld [vmem:[#allocation7 + $0x30] sm:$0xff] }
 0x109   :  { %1170 = vmatprep.subr.mxu1 %v489_v24  ;;  %v784_v24 = vld [vmem:[#allocation7 + $0xa8] sm:$0xff] }
 0x10a   :  { %1171 = vmatpush3.msra.mxu1 %v473_v25  ;;  %v768_v25 = vld [vmem:[#allocation7 + $0x28] sm:$0xff] }
 0x10b   :  { %1172 = vmatprep.subr.mxu1 %v488_v53  ;;  %v802_v53 = vld [vmem:[#allocation7 + $0x138] sm:$0xff] }
 0x10c   :  { %1173 = vmatpush3.msra.mxu1 %v472_v55  ;;  %v799_v55 = vld [vmem:[#allocation7 + $0x120] sm:$0xff] }
 0x10d   :  { %1174 = vmatprep.subr.mxu1 %v487_v56  ;;  %v780_v56 = vld [vmem:[#allocation7 + $0x88] sm:$0xff] }
 0x10e   :  { %1175 = vmatpush3.msra.mxu1 %v471_v58  ;;  %v764_v58 = vld [vmem:[#allocation7 + $0x8] sm:$0xff] }
 0x1ae   :  { %v1114_v26 = vpop.f32.mrf.mxu1 }
 0x1b0   :  { %v1115_v27 = vpop.f32.mrf.mxu1 }
 0x1b1   :  { %v1116_v28 = vadd.f32 %v1115_v27, %v1114_v26  ;;  %v783_v26 = vld [vmem:[#allocation7 + $0xa0] sm:$0xff] }
 0x1b2   :  { %v1117_v29 = vpop.f32.mrf.mxu1  ;;  %v1309_v30 = vpop.f32.mrf.mxu0  ;;  %v767_v27 = vld [vmem:[#allocation7 + $0x20] sm:$0xff] }
 0x1b3   :  { %v301_v34 = vadd.f32 %v1116_v28, %v1064_v31  ;;  %v782_v28 = vld [vmem:[#allocation7 + $0x98] sm:$0xff] }
 0x1b4   :  { %v1118_v32 = vpop.f32.mrf.mxu1  ;;  %v375_v35 = vpop.f32.mrf.mxu0 }
 0x1b5   :  { %v1119_v33 = vadd.f32 %v1118_v32, %v1117_v29  ;;  %v376_v37 = vadd.f32 %v375_v35, %v301_v34  ;;  %v766_v29 = vld [vmem:[#allocation7 + $0x18] sm:$0xff] }
 0x1b7   :  { %v306_v36 = vadd.f32 %v1119_v33, %v1064_v31  ;;  %v1623_v40 = vmax.f32 %v376_v37, 0.0  ;;  %v765_v31 = vld [vmem:[#allocation7 + $0x10] sm:$0xff]  ;;  %v1069_v37 = vld [vmem:[%s1674_s6] ss:$0 sm:$0xff] }
 0x1b9   :  { %v381_v38 = vadd.f32 %v1309_v30, %v306_v36  ;;  %v781_v30 = vld [vmem:[#allocation7 + $0x90] sm:$0xff] }
 0x1bb   :  { %v1621_v39 = vmax.f32 %v381_v38, 0.0 }
 0x1bd   :  { %1310 = vmatprep.subr.mxu0 %v1621_v39 }
 0x1be   :  { %1311 = vmatpush3.msra.mxu0 %v1621_v39 }
 0x1bf   :  { %1312 = vmatprep.subr.mxu0 %v1623_v40 }
 0x1c0   :  { %1313 = vmatpush3.msra.mxu0 %v1623_v40 }
 0x1c1   :  { %1315 = vmatmul.mubr.msk.f32.vlgmr.msra.gmra.mxu0 %vm81_vm0, %v1593_v3  ;;  %1320 = vmatprep.subr.mxu0 %v518_v41 }
 0x1c2   :  { %1317 = vmatprep.mubr.msk.f32.mxu0 %vm81_vm0, %v1600_v7  ;;  %1321 = vmatpush3.msra.mxu0 %v518_v41 }
 0x1c3   :  { %1322 = vmatprep.subr.mxu0 %v517_v42 }
 0x1c4   :  { %1323 = vmatpush3.msra.mxu0 %v517_v42 }
 0x1c5   :  { %1318 = vmatmul.mubr.msk.f32.gmra.mxu0 %vm81_vm0, %v1610_v12  ;;  %1324 = vmatprep.subr.mxu0 %v516_v43 }
 0x1c6   :  { %1325 = vmatpush3.msra.mxu0 %v516_v43 }
 0x1c7   :  { %1326 = vmatprep.subr.mxu0 %v515_v44 }
 0x1c8   :  { %1327 = vmatpush3.msra.mxu0 %v515_v44 }
 0x1c9   :  { %1328 = vmatprep.subr.mxu0 %v514_v45 }
 0x1ca   :  { %1329 = vmatpush3.msra.mxu0 %v514_v45 }
 0x1cb   :  { %1330 = vmatprep.subr.mxu0 %v513_v46 }
 0x1cc   :  { %1331 = vmatpush3.msra.mxu0 %v513_v46 }
 0x1cd   :  { %1332 = vmatprep.subr.mxu0 %v512_v47 }
 0x1ce   :  { %1333 = vmatpush3.msra.mxu0 %v512_v47  ;;  %v810_v47 = vld [vmem:[#allocation7 + $0x178] sm:$0xff] }
 0x1cf   :  { %1334 = vmatprep.subr.mxu0 %v511_v48 }
 0x1d0   :  { %1335 = vmatpush3.msra.mxu0 %v511_v48  ;;  %v809_v48 = vld [vmem:[#allocation7 + $0x170] sm:$0xff] }
 0x1d1   :  { %1336 = vmatprep.subr.mxu0 %v510_v49 }
 0x1d2   :  { %1337 = vmatpush3.msra.mxu0 %v510_v49  ;;  %v808_v49 = vld [vmem:[#allocation7 + $0x168] sm:$0xff] }
 0x1d3   :  { %1338 = vmatprep.subr.mxu0 %v509_v50 }
 0x1d4   :  { %1339 = vmatpush3.msra.mxu0 %v509_v50  ;;  %v807_v50 = vld [vmem:[#allocation7 + $0x160] sm:$0xff] }
 0x1d5   :  { %1340 = vmatprep.subr.mxu0 %v508_v51 }
 0x1d6   :  { %1341 = vmatpush3.msra.mxu0 %v508_v51  ;;  %v806_v51 = vld [vmem:[#allocation7 + $0x158] sm:$0xff] }
 0x1d7   :  { %1342 = vmatprep.subr.mxu0 %v507_v52 }
 0x1d8   :  { %1343 = vmatpush3.msra.mxu0 %v507_v52  ;;  %v805_v52 = vld [vmem:[#allocation7 + $0x150] sm:$0xff] }
 0x1d9   :  { %1344 = vmatprep.subr.mxu0 %v506_v54 }
 0x1da   :  { %1345 = vmatpush3.msra.mxu0 %v506_v54  ;;  %v801_v54 = vld [vmem:[#allocation7 + $0x130] sm:$0xff] }
 0x1db   :  { %1346 = vmatprep.subr.mxu0 %v505_v57 }
 0x1dc   :  { %1347 = vmatpush3.msra.mxu0 %v505_v57  ;;  %v798_v57 = vld [vmem:[#allocation7 + $0x118] sm:$0xff] }
 0x1dd   :  { %1348 = vmatprep.subr.mxu0 %v504_v59 }
 0x1de   :  { %1349 = vmatpush3.msra.mxu0 %v504_v59  ;;  %v779_v59 = vld [vmem:[#allocation7 + $0x80] sm:$0xff] }
 0x1df   :  { %1350 = vmatprep.subr.mxu0 %v503_v60 }
 0x1e0   :  { %1351 = vmatpush3.msra.mxu0 %v503_v60  ;;  %v797_v60 = vld [vmem:[#allocation7 + $0x110] sm:$0xff] }
 0x1e1   :  { %1206 = vmatprep.subr.mxu0 %v794_v4 }
 0x281   :  { %v1316_v61 = vpop.f32.mrf.mxu0 }
 0x283   :  { %v452_v62 = vpop.f32.mrf.mxu0 }
 0x284   :  { %590 = vmatprep.mubr.f32.mxu1 %v452_v62  ;;  %v796_v62 = vld [vmem:[#allocation7 + $0x108] sm:$0xff] }
 0x285   :  { %v1319_v63 = vpop.f32.mrf.mxu0  ;;  %591 = vmatmul.mubr.f32.vlgmr.msra.gmra.mxu1 %v1623_v40 }
 0x286   :  { %595 = vmatprep.mubr.f32.mxu1 %v1316_v61  ;;  %v763_v61 = vld [vmem:[#allocation7] sm:$0xff] }
 0x287   :  { %v462_v1 = vpop.f32.mrf.mxu0 }
 0x288   :  { %1352 = vmatprep.mubr.f32.mxu0 %v462_v1 }
 0x289   :  { %596 = vmatmul.mubr.f32.gmra.mxu1 %v1621_v39  ;;  %1353 = vmatmul.mubr.f32.vlgmr.msra.gmra.mxu0 %v1319_v63  ;;  %v795_v63 = vld [vmem:[#allocation7 + $0x100] sm:$0xff] }
 0x28a   :  { %1359 = vmatprep.mubr.msk.f32.mxu1 %vm81_vm0, %v1585_v2  ;;  %1207 = vmatpush3.msra.mxu0 %v778_v5  ;;  %v773_v2 = vld [vmem:[#allocation7 + $0x50] sm:$0xff] }
 0x28b   :  { %1208 = vmatprep.subr.mxu0 %v793_v0 }
 0x28c   :  { %1209 = vmatpush3.msra.mxu0 %v777_v6  ;;  %v1510_v6 = vmov 0.0  }
 0x28d   :  { %1210 = vmatprep.subr.mxu0 %v792_v8 }
 0x28e   :  { %1211 = vmatpush3.msra.mxu0 %v776_v9 }
 0x28f   :  { %1212 = vmatprep.subr.mxu0 %v791_v10 }
 0x290   :  { %1213 = vmatpush3.msra.mxu0 %v775_v11 }
 0x291   :  { %1214 = vmatprep.subr.mxu0 %v790_v13 }
 0x292   :  { %1215 = vmatpush3.msra.mxu0 %v774_v14  ;;  %v1074_v14 = vld [vmem:[%s1676_s8] ss:$0 sm:$0xff]  ;;  %s1512_s8 = smov [#allocation8]  }
 0x293   :  { %1216 = vmatprep.subr.mxu0 %v789_v15  ;;  %s1050_s18 = sshll.u32 %s1512_s8, 4  ;;  %s1051_s18 = int_to_ptr.vmem [resolvable:$true] %s1050_s18 }
 0x294   :  { %1217 = vmatpush3.msra.mxu0 %v773_v2  ;;  %s1479_s19 = scalar_lea.vmem %s1051_s18, 32  ;;  %p1484_p2 = scmp.lt.s32.totalorder %s1051_s18, %s1051_s18 }
 0x295   :  { %1218 = vmatprep.subr.mxu0 %v788_v16  ;;  %p1480_p1 = scmp.ne.s32.totalorder %s1051_s18, %s1479_s19  ;;  %p1485_p3 = scmp.lt.s32.totalorder %s1479_s19, %s1479_s19 }
 0x296   :  { %1219 = vmatpush3.msra.mxu0 %v772_v17 }
 0x297   :  { %1220 = vmatprep.subr.mxu0 %v787_v18  ;;  %p1486_p4 = por %p1485_p3, %p1484_p2 }
 0x298   :  { %1221 = vmatpush3.msra.mxu0 %v771_v19 }
 0x299   :  { %1222 = vmatprep.subr.mxu0 %v786_v20  ;;  %p1487_p5 = pnand %p1486_p4, %p1480_p1 }
 0x29a   :  { %1223 = vmatpush3.msra.mxu0 %v770_v21 }
 0x29b   :  { %1224 = vmatprep.subr.mxu0 %v785_v22  ;;  %v78_v22 = vld [vmem:[%s1670_s2] sm:$0x3] }
 0x29c   :  { %1225 = vmatpush3.msra.mxu0 %v769_v23 }
 0x29d   :  { %1226 = vmatprep.subr.mxu0 %v784_v24 }
 0x29e   :  { %1227 = vmatpush3.msra.mxu0 %v768_v25 }
 0x29f   :  { %1228 = vmatprep.subr.mxu0 %v783_v26 }
 0x2a0   :  { %1229 = vmatpush3.msra.mxu0 %v767_v27 }
 0x2a1   :  { %1230 = vmatprep.subr.mxu0 %v782_v28 }
 0x2a2   :  { %1231 = vmatpush3.msra.mxu0 %v766_v29 }
 0x2a3   :  { %1232 = vmatprep.subr.mxu0 %v781_v30 }
 0x2a4   :  { %1233 = vmatpush3.msra.mxu0 %v765_v31 }
 0x2a5   :  { %1234 = vmatprep.subr.mxu0 %v780_v56 }
 0x2a6   :  { %1235 = vmatpush3.msra.mxu0 %v764_v58 }
 0x2a7   :  { %1236 = vmatprep.subr.mxu0 %v779_v59 }
 0x2a8   :  { %1237 = vmatpush3.msra.mxu0 %v763_v61 }
 0x345   :  { %v1176_v32 = vpop.f32.mrf.mxu1 }
 0x347   :  { %v1177_v33 = vpop.f32.mrf.mxu1 }
 0x348   :  { %v1178_v34 = vadd.f32 %v1177_v33, %v1176_v32 }
 0x349   :  { %v1179_v35 = vpop.f32.mrf.mxu1  ;;  %v1354_v36 = vpop.f32.mrf.mxu0 }
 0x34a   :  { %v593_v40 = vadd.f32 %v1178_v34, %v1069_v37 }
 0x34b   :  { %v1180_v38 = vpop.f32.mrf.mxu1  ;;  %v667_v41 = vpop.f32.mrf.mxu0 }
 0x34c   :  { %v1181_v39 = vadd.f32 %v1180_v38, %v1179_v35  ;;  %v668_v43 = vadd.f32 %v667_v41, %v593_v40 }
 0x34e   :  { %v598_v42 = vadd.f32 %v1181_v39, %v1069_v37  ;;  %v1644_v46 = vmax.f32 %v668_v43, 0.0 }
 0x350   :  { %v673_v44 = vadd.f32 %v1354_v36, %v598_v42 }
 0x352   :  { %v1642_v45 = vmax.f32 %v673_v44, 0.0 }
 0x354   :  { %1355 = vmatprep.subr.mxu1 %v1642_v45 }
 0x355   :  { %1356 = vmatpush3.msra.mxu1 %v1642_v45 }
 0x356   :  { %1357 = vmatprep.subr.mxu1 %v1644_v46 }
 0x357   :  { %1358 = vmatpush3.msra.mxu1 %v1644_v46 }
 0x358   :  { %1360 = vmatmul.mubr.msk.f32.vlgmr.msra.gmra.mxu1 %vm81_vm0, %v1593_v3  ;;  %1365 = vmatprep.subr.mxu1 %v810_v47  ;;  %v804_v3 = vld [vmem:[#allocation7 + $0x148] sm:$0xff] }
 0x359   :  { %1362 = vmatprep.mubr.msk.f32.mxu1 %vm81_vm0, %v1600_v7  ;;  %1366 = vmatpush3.msra.mxu1 %v810_v47  ;;  %v803_v7 = vld [vmem:[#allocation7 + $0x140] sm:$0xff] }
 0x35a   :  { %1367 = vmatprep.subr.mxu1 %v809_v48 }
 0x35b   :  { %1368 = vmatpush3.msra.mxu1 %v809_v48 }
 0x35c   :  { %1363 = vmatmul.mubr.msk.f32.gmra.mxu1 %vm81_vm0, %v1610_v12  ;;  %1369 = vmatprep.subr.mxu1 %v808_v49  ;;  %v800_v12 = vld [vmem:[#allocation7 + $0x128] sm:$0xff] }
 0x35d   :  { %1370 = vmatpush3.msra.mxu1 %v808_v49 }
 0x35e   :  { %1371 = vmatprep.subr.mxu1 %v807_v50 }
 0x35f   :  { %1372 = vmatpush3.msra.mxu1 %v807_v50 }
 0x360   :  { %1373 = vmatprep.subr.mxu1 %v806_v51 }
 0x361   :  { %1374 = vmatpush3.msra.mxu1 %v806_v51 }
 0x362   :  { %1375 = vmatprep.subr.mxu1 %v805_v52 }
 0x363   :  { %1376 = vmatpush3.msra.mxu1 %v805_v52 }
 0x364   :  { %1377 = vmatprep.subr.mxu1 %v804_v3 }
 0x365   :  { %1378 = vmatpush3.msra.mxu1 %v804_v3 }
 0x366   :  { %1379 = vmatprep.subr.mxu1 %v803_v7 }
 0x367   :  { %1380 = vmatpush3.msra.mxu1 %v803_v7 }
 0x368   :  { %1381 = vmatprep.subr.mxu1 %v802_v53 }
 0x369   :  { %1382 = vmatpush3.msra.mxu1 %v802_v53 }
 0x36a   :  { %1383 = vmatprep.subr.mxu1 %v801_v54 }
 0x36b   :  { %1384 = vmatpush3.msra.mxu1 %v801_v54 }
 0x36c   :  { %1385 = vmatprep.subr.mxu1 %v800_v12 }
 0x36d   :  { %1386 = vmatpush3.msra.mxu1 %v800_v12 }
 0x36e   :  { %1387 = vmatprep.subr.mxu1 %v799_v55 }
 0x36f   :  { %1388 = vmatpush3.msra.mxu1 %v799_v55 }
 0x370   :  { %1389 = vmatprep.subr.mxu1 %v798_v57 }
 0x371   :  { %1390 = vmatpush3.msra.mxu1 %v798_v57 }
 0x372   :  { %1391 = vmatprep.subr.mxu1 %v797_v60 }
 0x373   :  { %1392 = vmatpush3.msra.mxu1 %v797_v60 }
 0x374   :  { %1393 = vmatprep.subr.mxu1 %v796_v62 }
 0x375   :  { %1394 = vmatpush3.msra.mxu1 %v796_v62 }
 0x376   :  { %1395 = vmatprep.subr.mxu1 %v795_v63 }
 0x377   :  { %1396 = vmatpush3.msra.mxu1 %v795_v63 }
 0x378   :  { %1400 = vmatprep.subr.mxu1 %v1510_v6 }
 0x418   :  { %v1361_v1 = vpop.f32.mrf.mxu1 }
 0x41a   :  { %v744_v4 = vpop.f32.mrf.mxu1 }
 0x41b   :  { %882 = vmatprep.mubr.f32.mxu0 %v744_v4 }
 0x41c   :  { %v1364_v5 = vpop.f32.mrf.mxu1  ;;  %883 = vmatmul.mubr.f32.vlgmr.msra.gmra.mxu0 %v1644_v46 }
 0x41d   :  { %887 = vmatprep.mubr.f32.mxu0 %v1361_v1 }
 0x41e   :  { %v754_v0 = vpop.f32.mrf.mxu1 }
 0x41f   :  { %1397 = vmatprep.mubr.f32.mxu1 %v754_v0 }
 0x420   :  { %888 = vmatmul.mubr.f32.gmra.mxu0 %v1642_v45  ;;  %1398 = vmatmul.mubr.f32.vlgmr.msra.gmra.mxu1 %v1364_v5 }
 0x421   :  { %1404 = vmatprep.mubr.msk.f32.mxu1 %vm1511_vm1, %v1510_v6 }
 0x4dc   :  { %v1238_v8 = vpop.f32.mrf.mxu0 }
 0x4de   :  { %v1239_v9 = vpop.f32.mrf.mxu0 }
 0x4df   :  { %v1240_v10 = vadd.f32 %v1239_v9, %v1238_v8 }
 0x4e0   :  { %v1241_v11 = vpop.f32.mrf.mxu0  ;;  %v1399_v13 = vpop.f32.mrf.mxu1 }
 0x4e1   :  { %v885_v16 = vadd.f32 %v1240_v10, %v1074_v14 }
 0x4e2   :  { %v1242_v15 = vpop.f32.mrf.mxu0  ;;  %v959_v17 = vpop.f32.mrf.mxu1 }
 0x4e3   :  { %v1243_v2 = vadd.f32 %v1242_v15, %v1241_v11  ;;  %v960_v20 = vadd.f32 %v959_v17, %v885_v16 }
 0x4e5   :  { %v890_v18 = vadd.f32 %v1243_v2, %v1074_v14 }
 0x4e7   :  { %v965_v19 = vadd.f32 %v1399_v13, %v890_v18 }
 0x4e9   :  { %1415 = vtanh.f32 %v965_v19 }
 0x4ea   :  { %1417 = vtanh.f32 %v960_v20 }
 0x4f6   :  { %v1416_v21 = vpop.eup %1415 }
 0x4f7   :  { %1401 = vmatpush3.msra.mxu1 %v1416_v21  ;;  %v1418_v23 = vpop.eup %1417 }
 0x4f8   :  { %1402 = vmatprep.subr.mxu1 %v1510_v6 }
 0x4f9   :  { %1403 = vmatpush3.msra.mxu1 %v1418_v23 }
 0x4fa   :  { %1405 = vmatmul.mubr.msk.f32.vlgmr.msra.gmra.mxu1 %vm81_vm0, %v78_v22 }
 0x5ba   :  { %v1039_v24 = vpop.f32.mrf.mxu1 }
 0x5bb   :  { %1043 = vst [vmem:[#allocation8] sm:$0x3] %v1039_v24 }
 0x5bc   :  { %v1406_v25 = vpop.f32.mrf.mxu1 }
 0x5bd   :  { %1490 = shalt.err (!%p1487_p5)
}
 0x5be   :  { %1053 = dma.vmem_to_hbm [thread:$0]  %s1051_s18, 32, %s1677_s9, [#allocation4]  }
 0x5bf   :  { %1503 = dma.done.wait [#allocation4], 32  }
 0x5c0   :  { %1504 = vsyncadd [#allocation4], 4294967264 }
 0x5c1   :  { %1057 = vsyncpa [#allocation3], 1 }
 0x5c2   :  { %1058 = vsyncpa [#allocation6], 1 }
 0x5c3   :  { %1059 = vsyncpa [#allocation4], 1 }

</bundles_post_ra>
